<compile_context>
chip_gen: v7x
topology: tpu7x:2x2x1
jax: 0.10.0
libtpu: 0.0.40
codegen_flags: <defaults>
</compile_context>

<pallas_src>
import functools

import jax
import jax.numpy as jnp
from jax.experimental import pallas as pl
from jax.experimental.pallas import tpu as pltpu


# ---------------------------------------------------------------------------
# Kernel
# ---------------------------------------------------------------------------
def _mlp_kernel(num_hidden_layer, *refs):
    # refs: x, w_in, s_in, t_in, [w_h_l, s_h_l, t_h_l]*L, w_out, b_out, out
    x_ref = refs[0]
    w_in_ref, s_in_ref, t_in_ref = refs[1], refs[2], refs[3]
    hid = refs[4:4 + 3 * num_hidden_layer]
    w_out_ref = refs[4 + 3 * num_hidden_layer]
    b_out_ref = refs[5 + 3 * num_hidden_layer]
    out_ref = refs[6 + 3 * num_hidden_layer]

    cdt = w_in_ref.dtype  # matmul-operand dtype (bf16 MXU fast path or f32)

    # Input layer: Linear -> (BN as f32 scale/shift epilogue) -> ReLU.
    # Dropout is identity in eval mode.
    h = jnp.dot(x_ref[...].astype(cdt), w_in_ref[...],
                preferred_element_type=jnp.float32)
    h = jnp.maximum(h * s_in_ref[...] + t_in_ref[...], 0.0)

    # Hidden layers (static Python unroll; per-layer refs, no in-kernel slicing).
    for l in range(num_hidden_layer):
        w_ref = hid[3 * l]
        s_ref = hid[3 * l + 1]
        t_ref = hid[3 * l + 2]
        h = jnp.dot(h.astype(cdt), w_ref[...], preferred_element_type=jnp.float32)
        h = jnp.maximum(h * s_ref[...] + t_ref[...], 0.0)

    # Output layer: plain Linear (no BN / activation); narrow f32 store.
    out = jnp.dot(h.astype(cdt), w_out_ref[...], preferred_element_type=jnp.float32)
    out_ref[...] = (out + b_out_ref[...]).astype(out_ref.dtype)


# ---------------------------------------------------------------------------
# Host-side helpers
# ---------------------------------------------------------------------------
def _round_up(v, m):
    return (v + m - 1) // m * m


def _pad2(a, rows, cols):
    return jnp.pad(a, ((0, rows - a.shape[0]), (0, cols - a.shape[1])))


def _pad_row(v, cols):
    return jnp.pad(v, (0, cols - v.shape[0])).reshape(1, cols)


def _resident_spec(a):
    """Full-array 2-D block whose index never changes -> stays VMEM-resident."""
    return pl.BlockSpec(a.shape, lambda i: (0, 0))


def timodule_forward(x, kparams, num_hidden_layer, *,
                     block_n_max=1024, min_grid_steps=2):
    """Fused TImodule forward pass as one Pallas call (eval-mode semantics)."""
    n, d = x.shape
    d_in, h_pad = kparams["w_in"].shape
    assert d_in == d, "context_dim mismatch between x and prepared params"
    d_out = kparams["w_out"].shape[1]

    # Batch tile: as large as block_n_max, but keep >= min_grid_steps grid
    # steps so v7x's two TensorCores both get work (parallel axis).
    bn = max(8, min(block_n_max, _round_up(pl.cdiv(n, min_grid_steps), 8)))
    n_pad = _round_up(n, bn)
    x_p = x if n_pad == n else jnp.pad(x, ((0, n_pad - n), (0, 0)))

    in_arrays = [x_p, kparams["w_in"], kparams["s_in"], kparams["t_in"]]
    for l in range(num_hidden_layer):
        in_arrays += [kparams["w_h"][l], kparams["s_h"][l], kparams["t_h"][l]]
    in_arrays += [kparams["w_out"], kparams["b_out"]]

    in_specs = [pl.BlockSpec((bn, d), lambda i: (i, 0))]
    in_specs += [_resident_spec(a) for a in in_arrays[1:]]

    # Explicit VMEM budget: resident params (double-buffered by default) +
    # streamed x/out blocks (double-buffered) + f32 activation temporaries,
    # with 1.5x + 4 MiB headroom; floor 32 MiB, cap 48 MiB (v7x-safe: < 64 MiB).
    nbytes = lambda a: a.size * a.dtype.itemsize
    resident_bytes = 2 * sum(nbytes(a) for a in in_arrays[1:])
    stream_bytes = 2 * bn * d * x_p.dtype.itemsize + 2 * bn * d_out * 4
    temp_bytes = 6 * bn * h_pad * 4
    budget = int(1.5 * (resident_bytes + stream_bytes + temp_bytes)) + (4 << 20)
    vmem_limit = min(max(budget, 32 << 20), 48 << 20)

    out = pl.pallas_call(
        functools.partial(_mlp_kernel, num_hidden_layer),
        grid=(n_pad // bn,),
        in_specs=in_specs,
        out_specs=pl.BlockSpec((bn, d_out), lambda i: (i, 0)),
        out_shape=jax.ShapeDtypeStruct((n_pad, d_out), jnp.float32),
        compiler_params=pltpu.CompilerParams(
            dimension_semantics=("parallel",),
            vmem_limit_bytes=vmem_limit),
    )(*in_arrays)
    return out if n_pad == n else out[:n]


def prepare_kernel_params(raw, num_hidden_layer, *, eps=1e-5,
                          compute_dtype=jnp.bfloat16, lane=128):
    """Convert eval-mode BN into per-column (scale, shift), pad features, cast.

    BN(x @ W + b) = (x @ W) * scale + shift,
      scale = gamma / sqrt(var + eps),  shift = (b - mean) * scale + beta.
    Only the hidden/output feature dims are padded to the lane width; the
    input feature dim of x / w_in stays un-padded. Padded columns have
    scale = shift = 0, so they stay exactly zero through ReLU and never
    pollute downstream layers.
    """
    d, hdim = raw["in"][0].shape
    h_pad = _round_up(hdim, lane)

    def split(w_t, b, g, be, m, v):
        scale = g / jnp.sqrt(v + eps)
        shift = (b - m) * scale + be
        return w_t, scale, shift

    def pack(params, in_rows):
        w_t, scale, shift = split(*params)
        w = _pad2(w_t, in_rows, h_pad).astype(compute_dtype)
        s = _pad_row(scale, h_pad)   # f32 epilogue
        t = _pad_row(shift, h_pad)   # f32 epilogue
        return w, s, t

    w_in, s_in, t_in = pack(raw["in"], d)
    w_h, s_h, t_h = [], [], []
    for l in range(num_hidden_layer):
        w, s, t = pack(raw["hidden"][l], h_pad)
        w_h.append(w); s_h.append(s); t_h.append(t)

    w_out = jnp.pad(raw["w_out"], ((0, h_pad - hdim), (0, 0))).astype(compute_dtype)
    b_out = raw["b_out"].astype(jnp.float32).reshape(1, -1)

    return {"w_in": w_in, "s_in": s_in, "t_in": t_in,
            "w_h": w_h, "s_h": s_h, "t_h": t_h,
            "w_out": w_out, "b_out": b_out}


def make_raw_params(key, context_dim, num_hidden_layer, num_hidden_neuron):
    """Deterministic synthetic parameters matching the PyTorch module shapes.

    Linear weights are stored pre-transposed as (in_features, out_features).
    """
    d, hdim, L = context_dim, num_hidden_neuron, num_hidden_layer
    keys = jax.random.split(key, 6 * (L + 2))
    ki = iter(keys)

    def linear_bn(fan_in, fan_out):
        w_t = jax.random.normal(next(ki), (fan_in, fan_out), jnp.float32) / jnp.sqrt(fan_in)
        b = 0.1 * jax.random.normal(next(ki), (fan_out,), jnp.float32)
        g = 1.0 + 0.1 * jax.random.normal(next(ki), (fan_out,), jnp.float32)
        be = 0.1 * jax.random.normal(next(ki), (fan_out,), jnp.float32)
        m = 0.1 * jax.random.normal(next(ki), (fan_out,), jnp.float32)
        v = jax.random.uniform(next(ki), (fan_out,), jnp.float32, 0.5, 1.5)
        return (w_t, b, g, be, m, v)

    raw = {
        "in": linear_bn(d, hdim),
        "hidden": [linear_bn(hdim, hdim) for _ in range(L)],
        "w_out": jax.random.normal(next(ki), (hdim, d), jnp.float32) / jnp.sqrt(hdim),
        "b_out": 0.1 * jax.random.normal(next(ki), (d,), jnp.float32),
    }
    return raw


def reference_forward(x, raw, num_hidden_layer, eps=1e-5):
    """Pure-JAX eval-mode reference (un-folded BN) for verification."""
    def lin_bn_relu(h, w_t, b, g, be, m, v):
        y = h @ w_t + b
        y = (y - m) / jnp.sqrt(v + eps) * g + be
        return jnp.maximum(y, 0.0)

    h = lin_bn_relu(x, *raw["in"])
    for l in range(num_hidden_layer):
        h = lin_bn_relu(h, *raw["hidden"][l])
    return h @ raw["w_out"] + raw["b_out"][None, :]


# ---------------------------------------------------------------------------
# Demo / verification
# ---------------------------------------------------------------------------
if __name__ == "__main__":
    context_dim = 16
    num_hidden_layer = 2
    num_hidden_neuron = 32
    dropout_p = 0.1  # unused in eval mode (Dropout = identity)
    batch = 64

    key = jax.random.PRNGKey(0)
    k_x, k_p = jax.random.split(key)
    x = jax.random.normal(k_x, (batch, context_dim), jnp.float32)
    raw = make_raw_params(k_p, context_dim, num_hidden_layer, num_hidden_neuron)

    ref = reference_forward(x, raw, num_hidden_layer)

    # jit the wrapper so the batch pad / final slice fuse with the pallas_call.
    fwd = jax.jit(functools.partial(timodule_forward,
                                    num_hidden_layer=num_hidden_layer))

    # f32 path: tight check of scale/shift rewrite + kernel semantics.
    # min_grid_steps=2 -> bn=32, grid=(2,): the batch pipeline axis is exercised.
    kp_f32 = prepare_kernel_params(raw, num_hidden_layer, compute_dtype=jnp.float32)
    out_f32 = jax.block_until_ready(fwd(x, kp_f32))
    assert out_f32.shape == (batch, context_dim)
    assert jnp.allclose(out_f32, ref, rtol=1e-4, atol=1e-4), "f32 mismatch vs reference"

    # bf16 operands (MXU fast path on v6e/v7x), f32 accumulation + f32 epilogue.
    kp_bf16 = prepare_kernel_params(raw, num_hidden_layer)  # default bfloat16
    out_bf16 = jax.block_until_ready(fwd(x, kp_bf16))
    assert out_bf16.shape == (batch, context_dim)
    assert jnp.max(jnp.abs(out_bf16 - ref)) < 1e-1, "bf16 mismatch vs reference"

    print("KERNEL_OK")
</pallas_src>

<mosaic_0001>
module attributes {stable_mosaic.version = 11 : i64} {
  func.func @_mlp_kernel(%arg0: i32, %arg1: memref<32x16xf32, #tpu.memory_space<vmem>>, %arg2: memref<16x128xf32, #tpu.memory_space<vmem>>, %arg3: memref<1x128xf32, #tpu.memory_space<vmem>>, %arg4: memref<1x128xf32, #tpu.memory_space<vmem>>, %arg5: memref<128x128xf32, #tpu.memory_space<vmem>>, %arg6: memref<1x128xf32, #tpu.memory_space<vmem>>, %arg7: memref<1x128xf32, #tpu.memory_space<vmem>>, %arg8: memref<128x128xf32, #tpu.memory_space<vmem>>, %arg9: memref<1x128xf32, #tpu.memory_space<vmem>>, %arg10: memref<1x128xf32, #tpu.memory_space<vmem>>, %arg11: memref<128x16xf32, #tpu.memory_space<vmem>>, %arg12: memref<1x16xf32, #tpu.memory_space<vmem>>, %arg13: memref<32x16xf32, #tpu.memory_space<vmem>>) attributes {dimension_semantics = [#tpu.dimension_semantics<parallel>], iteration_bounds = array<i64: 2>, scalar_prefetch = 0 : i64, scratch_operands = 0 : i64, tpu.core_type = #tpu.core_type<tc>, window_params = [{transform_indices = @transform_0, window_bounds = array<i64: 32, 16>}, {pipeline_mode = #tpu.pipeline_mode<synchronous>, transform_indices = @transform_1, window_bounds = array<i64: 16, 128>}, {pipeline_mode = #tpu.pipeline_mode<synchronous>, transform_indices = @transform_2, window_bounds = array<i64: 1, 128>}, {pipeline_mode = #tpu.pipeline_mode<synchronous>, transform_indices = @transform_3, window_bounds = array<i64: 1, 128>}, {pipeline_mode = #tpu.pipeline_mode<synchronous>, transform_indices = @transform_4, window_bounds = array<i64: 128, 128>}, {pipeline_mode = #tpu.pipeline_mode<synchronous>, transform_indices = @transform_5, window_bounds = array<i64: 1, 128>}, {pipeline_mode = #tpu.pipeline_mode<synchronous>, transform_indices = @transform_6, window_bounds = array<i64: 1, 128>}, {pipeline_mode = #tpu.pipeline_mode<synchronous>, transform_indices = @transform_7, window_bounds = array<i64: 128, 128>}, {pipeline_mode = #tpu.pipeline_mode<synchronous>, transform_indices = @transform_8, window_bounds = array<i64: 1, 128>}, {pipeline_mode = #tpu.pipeline_mode<synchronous>, transform_indices = @transform_9, window_bounds = array<i64: 1, 128>}, {pipeline_mode = #tpu.pipeline_mode<synchronous>, transform_indices = @transform_10, window_bounds = array<i64: 128, 16>}, {pipeline_mode = #tpu.pipeline_mode<synchronous>, transform_indices = @transform_11, window_bounds = array<i64: 1, 16>}, {transform_indices = @transform_12, window_bounds = array<i64: 32, 16>}]} {
    %c0 = arith.constant 0 : index
    %c0_0 = arith.constant 0 : index
    %0 = vector.load %arg1[%c0, %c0_0] : memref<32x16xf32, #tpu.memory_space<vmem>>, vector<32x16xf32>
    %c0_1 = arith.constant 0 : index
    %c0_2 = arith.constant 0 : index
    %1 = vector.load %arg2[%c0_1, %c0_2] : memref<16x128xf32, #tpu.memory_space<vmem>>, vector<16x128xf32>
    %cst = arith.constant dense<0.000000e+00> : vector<32x128xf32>
    %2 = tpu.matmul %0, %1, %cst {dimension_numbers = #tpu.dot_dimension_numbers<[1], [0], [0], [1], [0, 0, 1, 1], [], []>} : vector<32x16xf32>, vector<16x128xf32>, vector<32x128xf32> -> vector<32x128xf32>
    %c0_3 = arith.constant 0 : index
    %c0_4 = arith.constant 0 : index
    %3 = vector.load %arg3[%c0_3, %c0_4] : memref<1x128xf32, #tpu.memory_space<vmem>>, vector<1x128xf32>
    %4 = vector.broadcast %3 : vector<1x128xf32> to vector<32x128xf32>
    %5 = arith.mulf %2, %4 : vector<32x128xf32>
    %c0_5 = arith.constant 0 : index
    %c0_6 = arith.constant 0 : index
    %6 = vector.load %arg4[%c0_5, %c0_6] : memref<1x128xf32, #tpu.memory_space<vmem>>, vector<1x128xf32>
    %7 = vector.broadcast %6 : vector<1x128xf32> to vector<32x128xf32>
    %8 = arith.addf %5, %7 : vector<32x128xf32>
    %cst_7 = arith.constant 0.000000e+00 : f32
    %9 = vector.broadcast %cst_7 : f32 to vector<32x128xf32>
    %10 = arith.maximumf %8, %9 : vector<32x128xf32>
    %c0_8 = arith.constant 0 : index
    %c0_9 = arith.constant 0 : index
    %11 = vector.load %arg5[%c0_8, %c0_9] : memref<128x128xf32, #tpu.memory_space<vmem>>, vector<128x128xf32>
    %cst_10 = arith.constant dense<0.000000e+00> : vector<32x128xf32>
    %12 = tpu.matmul %10, %11, %cst_10 {dimension_numbers = #tpu.dot_dimension_numbers<[1], [0], [0], [1], [0, 0, 1, 1], [], []>} : vector<32x128xf32>, vector<128x128xf32>, vector<32x128xf32> -> vector<32x128xf32>
    %c0_11 = arith.constant 0 : index
    %c0_12 = arith.constant 0 : index
    %13 = vector.load %arg6[%c0_11, %c0_12] : memref<1x128xf32, #tpu.memory_space<vmem>>, vector<1x128xf32>
    %14 = vector.broadcast %13 : vector<1x128xf32> to vector<32x128xf32>
    %15 = arith.mulf %12, %14 : vector<32x128xf32>
    %c0_13 = arith.constant 0 : index
    %c0_14 = arith.constant 0 : index
    %16 = vector.load %arg7[%c0_13, %c0_14] : memref<1x128xf32, #tpu.memory_space<vmem>>, vector<1x128xf32>
    %17 = vector.broadcast %16 : vector<1x128xf32> to vector<32x128xf32>
    %18 = arith.addf %15, %17 : vector<32x128xf32>
    %cst_15 = arith.constant 0.000000e+00 : f32
    %19 = vector.broadcast %cst_15 : f32 to vector<32x128xf32>
    %20 = arith.maximumf %18, %19 : vector<32x128xf32>
    %c0_16 = arith.constant 0 : index
    %c0_17 = arith.constant 0 : index
    %21 = vector.load %arg8[%c0_16, %c0_17] : memref<128x128xf32, #tpu.memory_space<vmem>>, vector<128x128xf32>
    %cst_18 = arith.constant dense<0.000000e+00> : vector<32x128xf32>
    %22 = tpu.matmul %20, %21, %cst_18 {dimension_numbers = #tpu.dot_dimension_numbers<[1], [0], [0], [1], [0, 0, 1, 1], [], []>} : vector<32x128xf32>, vector<128x128xf32>, vector<32x128xf32> -> vector<32x128xf32>
    %c0_19 = arith.constant 0 : index
    %c0_20 = arith.constant 0 : index
    %23 = vector.load %arg9[%c0_19, %c0_20] : memref<1x128xf32, #tpu.memory_space<vmem>>, vector<1x128xf32>
    %24 = vector.broadcast %23 : vector<1x128xf32> to vector<32x128xf32>
    %25 = arith.mulf %22, %24 : vector<32x128xf32>
    %c0_21 = arith.constant 0 : index
    %c0_22 = arith.constant 0 : index
    %26 = vector.load %arg10[%c0_21, %c0_22] : memref<1x128xf32, #tpu.memory_space<vmem>>, vector<1x128xf32>
    %27 = vector.broadcast %26 : vector<1x128xf32> to vector<32x128xf32>
    %28 = arith.addf %25, %27 : vector<32x128xf32>
    %cst_23 = arith.constant 0.000000e+00 : f32
    %29 = vector.broadcast %cst_23 : f32 to vector<32x128xf32>
    %30 = arith.maximumf %28, %29 : vector<32x128xf32>
    %c0_24 = arith.constant 0 : index
    %c0_25 = arith.constant 0 : index
    %31 = vector.load %arg11[%c0_24, %c0_25] : memref<128x16xf32, #tpu.memory_space<vmem>>, vector<128x16xf32>
    %cst_26 = arith.constant dense<0.000000e+00> : vector<32x16xf32>
    %32 = tpu.matmul %30, %31, %cst_26 {dimension_numbers = #tpu.dot_dimension_numbers<[1], [0], [0], [1], [0, 0, 1, 1], [], []>} : vector<32x128xf32>, vector<128x16xf32>, vector<32x16xf32> -> vector<32x16xf32>
    %c0_27 = arith.constant 0 : index
    %c0_28 = arith.constant 0 : index
    %33 = vector.load %arg12[%c0_27, %c0_28] : memref<1x16xf32, #tpu.memory_space<vmem>>, vector<1x16xf32>
    %34 = vector.broadcast %33 : vector<1x16xf32> to vector<32x16xf32>
    %35 = arith.addf %32, %34 : vector<32x16xf32>
    %c0_29 = arith.constant 0 : index
    %c0_30 = arith.constant 0 : index
    %36 = vector.load %arg13[%c0_29, %c0_30] : memref<32x16xf32, #tpu.memory_space<vmem>>, vector<32x16xf32>
    tpu.vector_store %arg13[%c0_29, %c0_30], %35 {strides = array<i32>} : memref<32x16xf32, #tpu.memory_space<vmem>>, vector<32x16xf32>,
    return
  }
  func.func @transform_0(%arg0: i32) -> (i32, i32) {
    %c0_i32 = arith.constant 0 : i32
    %c0_i32_0 = arith.constant 0 : i32
    return %arg0, %c0_i32 : i32, i32
  }
  func.func @transform_1(%arg0: i32) -> (i32, i32) {
    %c0_i32 = arith.constant 0 : i32
    %c0_i32_0 = arith.constant 0 : i32
    %c0_i32_1 = arith.constant 0 : i32
    return %c0_i32, %c0_i32_0 : i32, i32
  }
  func.func @transform_2(%arg0: i32) -> (i32, i32) {
    %c0_i32 = arith.constant 0 : i32
    %c0_i32_0 = arith.constant 0 : i32
    %c0_i32_1 = arith.constant 0 : i32
    return %c0_i32, %c0_i32_0 : i32, i32
  }
  func.func @transform_3(%arg0: i32) -> (i32, i32) {
    %c0_i32 = arith.constant 0 : i32
    %c0_i32_0 = arith.constant 0 : i32
    %c0_i32_1 = arith.constant 0 : i32
    return %c0_i32, %c0_i32_0 : i32, i32
  }
  func.func @transform_4(%arg0: i32) -> (i32, i32) {
    %c0_i32 = arith.constant 0 : i32
    %c0_i32_0 = arith.constant 0 : i32
    %c0_i32_1 = arith.constant 0 : i32
    return %c0_i32, %c0_i32_0 : i32, i32
  }
  func.func @transform_5(%arg0: i32) -> (i32, i32) {
    %c0_i32 = arith.constant 0 : i32
    %c0_i32_0 = arith.constant 0 : i32
    %c0_i32_1 = arith.constant 0 : i32
    return %c0_i32, %c0_i32_0 : i32, i32
  }
  func.func @transform_6(%arg0: i32) -> (i32, i32) {
    %c0_i32 = arith.constant 0 : i32
    %c0_i32_0 = arith.constant 0 : i32
    %c0_i32_1 = arith.constant 0 : i32
    return %c0_i32, %c0_i32_0 : i32, i32
  }
  func.func @transform_7(%arg0: i32) -> (i32, i32) {
    %c0_i32 = arith.constant 0 : i32
    %c0_i32_0 = arith.constant 0 : i32
    %c0_i32_1 = arith.constant 0 : i32
    return %c0_i32, %c0_i32_0 : i32, i32
  }
  func.func @transform_8(%arg0: i32) -> (i32, i32) {
    %c0_i32 = arith.constant 0 : i32
    %c0_i32_0 = arith.constant 0 : i32
    %c0_i32_1 = arith.constant 0 : i32
    return %c0_i32, %c0_i32_0 : i32, i32
  }
  func.func @transform_9(%arg0: i32) -> (i32, i32) {
    %c0_i32 = arith.constant 0 : i32
    %c0_i32_0 = arith.constant 0 : i32
    %c0_i32_1 = arith.constant 0 : i32
    return %c0_i32, %c0_i32_0 : i32, i32
  }
  func.func @transform_10(%arg0: i32) -> (i32, i32) {
    %c0_i32 = arith.constant 0 : i32
    %c0_i32_0 = arith.constant 0 : i32
    %c0_i32_1 = arith.constant 0 : i32
    return %c0_i32, %c0_i32_0 : i32, i32
  }
  func.func @transform_11(%arg0: i32) -> (i32, i32) {
    %c0_i32 = arith.constant 0 : i32
    %c0_i32_0 = arith.constant 0 : i32
    %c0_i32_1 = arith.constant 0 : i32
    return %c0_i32, %c0_i32_0 : i32, i32
  }
  func.func @transform_12(%arg0: i32) -> (i32, i32) {
    %c0_i32 = arith.constant 0 : i32
    %c0_i32_0 = arith.constant 0 : i32
    return %arg0, %c0_i32 : i32, i32
  }
}

</mosaic_0001>

<bundles_post_ra>
// kernel: timodule_forward.1
= control target key start
LH: loop header
LB: loop body
LE: loop exit
PB: predicated region body
PF: predicated region fallthrough
CT: control target
= control target key end

     0   :  { %17 = vsyncpa [#allocation3], 0  ;;  %s2127_s0 = inlined_call_operand.vmem [shape: f32[64,16], index: 0, kind: input, shape index: {}]   ;;  %s2128_s1 = inlined_call_operand.hbm [shape: f32[16,128], index: 1, kind: input, shape index: {}]   ;;  %s2129_s2 = inlined_call_operand.vmem [shape: f32[1,128], index: 2, kind: input, shape index: {}]   ;;  %s2130_s3 = inlined_call_operand.vmem [shape: f32[1,128], index: 3, kind: input, shape index: {}]   ;;  %s2131_s4 = inlined_call_operand.vmem [shape: f32[128,128], index: 4, kind: input, shape index: {}]   ;;  %s2132_s5 = inlined_call_operand.hbm [shape: f32[1,128], index: 5, kind: input, shape index: {}]   ;;  %s2133_s6 = inlined_call_operand.hbm [shape: f32[1,128], index: 6, kind: input, shape index: {}]   ;;  %s2134_s7 = inlined_call_operand.vmem [shape: f32[128,128], index: 7, kind: input, shape index: {}]   ;;  %s2135_s8 = inlined_call_operand.hbm [shape: f32[1,128], index: 8, kind: input, shape index: {}]   ;;  %s2136_s9 = inlined_call_operand.hbm [shape: f32[1,128], index: 9, kind: input, shape index: {}]   ;;  %s2137_s10 = inlined_call_operand.vmem [shape: f32[128,16], index: 10, kind: input, shape index: {}]   ;;  %s2138_s11 = inlined_call_operand.hbm [shape: f32[1,16], index: 11, kind: input, shape index: {}]   ;;  %s2139_s12 = inlined_call_operand.vmem [shape: f32[64,16], index: 12, kind: output, shape index: {}]  }
   0x1   :  { %18 = vsyncpa [#allocation5], 0 }
   0x2   :  { %19 = vsyncpa [#allocation8], 0 }
   0x3   :  { %20 = vsyncpa [#allocation11], 0  ;;  %s1767_s21 = smov 0  }
   0x4 LB: > { %s1694_s22 = smov [#allocation4]   ;;  %s2140_s24 = sadd.s32 4294967295, %s1692_s21   ;;  %s1692_s21 = sphi %s1767_s21, %s26_s21  }
   0x5   : > { %s349_s23 = sshll.u32 %s1694_s22, 4  ;;  %p1109_p0 = scmp.ge.s32.totalorder %s1692_s21, 1  ;;  %s1781_s23 = int_to_ptr.vmem [resolvable:$true] %s349_s23 }
   0x6   : > { %p314_p1 = scmp.lt.s32.totalorder %s1692_s21, 3  ;;  %p1777_p2 = scmp.eq.s32.totalorder %s2140_s24, 0 }
   0x7   : > { %s1695_s27 = smov [#allocation7]   ;;  %s1696_s29 = smov [#allocation2]  }
   0x8   : > { %s2144_s25 = scalar_select %p1777_p2, 1, 0 }
   0x9   : > { %p1783_p3 = pnand %p1109_p0, %p314_p1  ;;  %s374_s28 = sshll.u32 %s1695_s27, 4  ;;  %s1789_s28 = int_to_ptr.vmem [resolvable:$true] %s374_s28 }
   0xa   : > { %s326_s30 = sshll.u32 %s1696_s29, 4  ;;  %s1697_s14 = smov [#allocation6]   ;;  %s1797_s30 = int_to_ptr.vmem [resolvable:$true] %s326_s30 }
   0xb   : > { %s2145_s26 = scalar_select %p1783_p3, 1, 0 }
   0xc   : > { %p1455_p4 = pneg %p1783_p3  ;;  %s1799_s15 = sshll.u32 %s1697_s14, 4  ;;  %s361_s15 = int_to_ptr.vmem [resolvable:$true] %s1799_s15 }
   0xd   : > { %s1502_s18 = scalar_lea.hbm %s2132_s5, 16 }
   0xe   : > { %p1793_p5 = pnand %p1777_p2, %p1455_p4  ;;  %p1503_p6 = scmp.ne.s32.totalorder %s2132_s5, %s1502_s18 }
   0xf   : > { %p1509_p10 = scmp.lt.u32.totalorder %s1502_s18, %s2132_s5 }
  0x10   : > { %p1809_p7 = pneg %p1793_p5 }
  0x12   : > { %p1505_p8 = pnand %p1809_p7, %p1503_p6 }
  0x14   : > { %p1506_p9 = pneg %p1505_p8 }
  0x16   : > { %p1511_p11 = pnand %p1509_p10, %p1506_p9 }
  0x18   : > { %1514 = shalt.err (!%p1511_p11)
}
  0x19   : > { %s1515_s14 = scalar_lea.vmem %s1781_s23, 16  ;;  %s1522_s16 = scalar_lea.vmem %s1781_s23, 32 }
  0x1a   : > { %p1516_p12 = scmp.ne.s32.totalorder %s1781_s23, %s1515_s14  ;;  %p1523_p1 = scmp.lt.s32.totalorder %s1781_s23, %s1781_s23 }
  0x1b   : > { %p1524_p4 = scmp.lt.s32.totalorder %s1522_s16, %s1515_s14 }
  0x1c   : > { %p1518_p13 = pnand %p1516_p12, %p1809_p7 }
  0x1d   : > { %p1525_p6 = por %p1524_p4, %p1523_p1 }
  0x1e   : > { %p1519_p0 = pneg %p1518_p13 }
  0x20   : > { %p1526_p8 = pnand %p1525_p6, %p1519_p0 }
  0x22   : > { %1529 = shalt.err (!%p1526_p8)
}
  0x23   : > { %1461 = dma.hbm_to_vmem [thread:$0]  (!%p1793_p5), %s2132_s5, 16, %s1781_s23, [#allocation5]  }
  0x24   : > { %s1530_s27 = scalar_lea.hbm %s2135_s8, 16 }
  0x25   : > { %p1531_p9 = scmp.ne.s32.totalorder %s2135_s8, %s1530_s27  ;;  %p1537_p12 = scmp.lt.u32.totalorder %s1530_s27, %s2135_s8 }
  0x27   : > { %p1533_p10 = pnand %p1531_p9, %p1809_p7 }
  0x29   : > { %p1534_p11 = pneg %p1533_p10 }
  0x2b   : > { %p1539_p13 = pnand %p1537_p12, %p1534_p11 }
  0x2d   : > { %1542 = shalt.err (!%p1539_p13)
}
  0x2e   : > { %s1543_s23 = scalar_lea.vmem %s1789_s28, 16  ;;  %s1550_s24 = scalar_lea.vmem %s1789_s28, 32 }
  0x2f   : > { %p1544_p0 = scmp.ne.s32.totalorder %s1789_s28, %s1543_s23  ;;  %p1551_p6 = scmp.lt.s32.totalorder %s1789_s28, %s1789_s28 }
  0x30   : > { %p1552_p8 = scmp.lt.s32.totalorder %s1550_s24, %s1543_s23 }
  0x31   : > { %p1546_p1 = pnand %p1544_p0, %p1809_p7 }
  0x32   : > { %p1553_p9 = por %p1552_p8, %p1551_p6 }
  0x33   : > { %p1547_p4 = pneg %p1546_p1 }
  0x35   : > { %p1554_p10 = pnand %p1553_p9, %p1547_p4 }
  0x37   : > { %1557 = shalt.err (!%p1554_p10)
}
  0x38   : > { %1467 = dma.hbm_to_vmem [thread:$0]  (!%p1793_p5), %s2135_s8, 16, %s1789_s28, [#allocation8]  }
  0x39   : > { %s1558_s27 = scalar_lea.hbm %s2128_s1, 256 }
  0x3a   : > { %p1559_p11 = scmp.ne.s32.totalorder %s2128_s1, %s1558_s27  ;;  %p1565_p0 = scmp.lt.u32.totalorder %s1558_s27, %s2128_s1 }
  0x3c   : > { %p1561_p12 = pnand %p1559_p11, %p1809_p7 }
  0x3e   : > { %p1562_p13 = pneg %p1561_p12 }
  0x40   : > { %p1567_p1 = pnand %p1565_p0, %p1562_p13 }
  0x42   : > { %1570 = shalt.err (!%p1567_p1)
}
  0x43   : > { %s1571_s28 = scalar_lea.vmem %s1797_s30, 256  ;;  %p1579_p9 = scmp.lt.s32.totalorder %s1797_s30, %s1797_s30 }
  0x44   : > { %p1572_p4 = scmp.ne.s32.totalorder %s1797_s30, %s1571_s28  ;;  %p1580_p10 = scmp.lt.s32.totalorder %s1571_s28, %s1571_s28 }
  0x46   : > { %p1574_p6 = pnand %p1572_p4, %p1809_p7  ;;  %p1581_p11 = por %p1580_p10, %p1579_p9 }
  0x48   : > { %p1575_p8 = pneg %p1574_p6 }
  0x4a   : > { %p1582_p12 = pnand %p1581_p11, %p1575_p8 }
  0x4c   : > { %1585 = shalt.err (!%p1582_p12)
}
  0x4d   : > { %s1698_s24 = smov 128   ;;  %s1699_s17 = smov 8  }
  0x4e   : > { %1458 = dma.hbm_to_vmem [thread:$0]  (!%p1793_p5), %s2128_s1, 256, %s1797_s30, [#allocation3], %s1698_s24, %s1698_s24, %s1699_s17  }
  0x4f   : > { %s1586_s29 = scalar_lea.hbm %s2133_s6, 16 }
  0x50   : > { %p1587_p13 = scmp.ne.s32.totalorder %s2133_s6, %s1586_s29  ;;  %p1593_p4 = scmp.lt.u32.totalorder %s1586_s29, %s2133_s6 }
  0x52   : > { %p1589_p0 = pnand %p1587_p13, %p1809_p7 }
  0x54   : > { %p1590_p1 = pneg %p1589_p0 }
  0x56   : > { %p1595_p6 = pnand %p1593_p4, %p1590_p1 }
  0x58   : > { %1598 = shalt.err (!%p1595_p6)
}
  0x59   : > { %s1599_s18 = scalar_lea.vmem %s361_s15, 16  ;;  %s1606_s30 = scalar_lea.vmem %s361_s15, 32 }
  0x5a   : > { %p1600_p8 = scmp.ne.s32.totalorder %s361_s15, %s1599_s18  ;;  %p1607_p11 = scmp.lt.s32.totalorder %s361_s15, %s361_s15 }
  0x5b   : > { %p1608_p12 = scmp.lt.s32.totalorder %s1606_s30, %s1599_s18 }
  0x5c   : > { %p1602_p9 = pnand %p1600_p8, %p1809_p7 }
  0x5d   : > { %p1609_p2 = por %p1608_p12, %p1607_p11 }
  0x5e   : > { %p1603_p10 = pneg %p1602_p9 }
  0x60   : > { %p1610_p3 = pnand %p1609_p2, %p1603_p10 }
  0x62   : > { %1613 = shalt.err (!%p1610_p3)
}
  0x63   : > { %1464 = dma.hbm_to_vmem [thread:$0]  (!%p1793_p5), %s2133_s6, 16, %s361_s15, [#allocation5]  }
  0x64   : > { %s1700_s19 = smov [#allocation9]   ;;  %s1701_s27 = smov [#allocation10]  }
  0x65   : > { %s385_s20 = sshll.u32 %s1700_s19, 4  ;;  %s399_s29 = sshll.u32 %s1701_s27, 4  ;;  %s386_s20 = int_to_ptr.vmem [resolvable:$true] %s385_s20  ;;  %s400_s29 = int_to_ptr.vmem [resolvable:$true] %s399_s29 }
  0x66   : > { %s1614_s23 = scalar_lea.hbm %s2136_s9, 16 }
  0x67   : > { %p1615_p2 = scmp.ne.s32.totalorder %s2136_s9, %s1614_s23  ;;  %p1621_p0 = scmp.lt.u32.totalorder %s1614_s23, %s2136_s9 }
  0x69   : > { %p1617_p3 = pnand %p1615_p2, %p1809_p7 }
  0x6b   : > { %p1618_p13 = pneg %p1617_p3 }
  0x6d   : > { %p1623_p1 = pnand %p1621_p0, %p1618_p13 }
  0x6f   : > { %1626 = shalt.err (!%p1623_p1)
}
  0x70   : > { %s1627_s15 = scalar_lea.vmem %s386_s20, 16  ;;  %s1634_s17 = scalar_lea.vmem %s386_s20, 32 }
  0x71   : > { %p1628_p4 = scmp.ne.s32.totalorder %s386_s20, %s1627_s15  ;;  %p1635_p9 = scmp.lt.s32.totalorder %s386_s20, %s386_s20 }
  0x72   : > { %p1636_p10 = scmp.lt.s32.totalorder %s1634_s17, %s1627_s15 }
  0x73   : > { %p1630_p6 = pnand %p1628_p4, %p1809_p7 }
  0x74   : > { %p1637_p11 = por %p1636_p10, %p1635_p9 }
  0x75   : > { %p1631_p8 = pneg %p1630_p6 }
  0x77   : > { %p1638_p12 = pnand %p1637_p11, %p1631_p8 }
  0x79   : > { %1641 = shalt.err (!%p1638_p12)
}
  0x7a   : > { %1470 = dma.hbm_to_vmem [thread:$0]  (!%p1793_p5), %s2136_s9, 16, %s386_s20, [#allocation8]  }
  0x7b   : > { %s1642_s23 = scalar_lea.hbm %s2138_s11, 16 }
  0x7c   : > { %p1643_p2 = scmp.ne.s32.totalorder %s2138_s11, %s1642_s23  ;;  %p1649_p0 = scmp.lt.u32.totalorder %s1642_s23, %s2138_s11 }
  0x7e   : > { %p1645_p3 = pnand %p1643_p2, %p1809_p7 }
  0x80   : > { %p1646_p13 = pneg %p1645_p3 }
  0x82   : > { %p1651_p1 = pnand %p1649_p0, %p1646_p13 }
  0x84   : > { %1654 = shalt.err (!%p1651_p1)
}
  0x85   : > { %s1655_s15 = scalar_lea.vmem %s400_s29, 16  ;;  %s1662_s20 = scalar_lea.vmem %s400_s29, 32 }
  0x86   : > { %p1656_p4 = scmp.ne.s32.totalorder %s400_s29, %s1655_s15  ;;  %p1663_p9 = scmp.lt.s32.totalorder %s400_s29, %s400_s29 }
  0x87   : > { %p1664_p10 = scmp.lt.s32.totalorder %s1662_s20, %s1655_s15 }
  0x88   : > { %p1658_p6 = pnand %p1656_p4, %p1809_p7 }
  0x89   : > { %p1665_p11 = por %p1664_p10, %p1663_p9 }
  0x8a   : > { %p1659_p8 = pneg %p1658_p6 }
  0x8c   : > { %p1666_p12 = pnand %p1665_p11, %p1659_p8 }
  0x8e   : > { %1669 = shalt.err (!%p1666_p12)
}
  0x8f   : > { %1473 = dma.hbm_to_vmem [thread:$0]  (!%p1793_p5), %s2138_s11, 16, %s400_s29, [#allocation11]  }
  0x90   : > { %p2148_p2 = scmp.ne.s32.totalorder %s2145_s26, 0 }
  0x91   : > { %p2149_p3 = scmp.ne.s32.totalorder (!%p2148_p2), %s2144_s25, 0 }
  0x92   : > { %421 = sbr.rel (%p2148_p2) target bundleno = 1049 (0x419), region = 68 }
  0x99   : > { %1675 = dma.done.wait (%p2149_p3), [#allocation3], 256  }
  0x9a   : > { %1677 = vsyncadd (%p2149_p3), [#allocation3], 4294967040 }
  0x9b   : > { %1679 = dma.done.wait (%p2149_p3), [#allocation5], 32  }
  0x9c   : > { %1681 = vsyncadd (%p2149_p3), [#allocation5], 4294967264 }
  0x9d   : > { %1683 = dma.done.wait (%p2149_p3), [#allocation8], 32  }
  0x9e   : > { %1685 = vsyncadd (%p2149_p3), [#allocation8], 4294967264 }
  0x9f   : > { %1687 = dma.done.wait (%p2149_p3), [#allocation11], 16  }
  0xa0   : > { %1689 = vsyncadd (%p2149_p3), [#allocation11], 4294967280  ;;  %s2150_s26 = sadd.s32 4294967295, %s1692_s21   ;;  %vm501_vm0 = vcmask 130048   ;;  %v499_v0 = vld [vmem:[#allocation2] sm:$0xff]  ;;  %v500_v1 = vld [vmem:[#allocation2 + $0x8] sm:$0xff] }
  0xa1   : > { %s1124_s13 = sshll.u32 %s2150_s26, 2  ;;  %v1331_v3 = vpack.c.bf16 %v500_v1, %v499_v0  ;;  %v625_v4 = vld [vmem:[%s2131_s4] sm:$0xff]  ;;  %v626_v5 = vld [vmem:[%s2131_s4 + $0x8] sm:$0xff]  ;;  %v627_v6 = vld [vmem:[%s2131_s4 + $0x10] sm:$0xff] }
  0xa2   : > { %p484_p5 = scmp.lt.s32.totalorder %s1124_s13, 7  ;;  %v1335_v7 = vpack.c.bf16 %v626_v5, %v625_v4  ;;  %v628_v8 = vld [vmem:[%s2131_s4 + $0x18] sm:$0xff]  ;;  %v629_v11 = vld [vmem:[%s2131_s4 + $0x20] sm:$0xff]  ;;  %v630_v12 = vld [vmem:[%s2131_s4 + $0x28] sm:$0xff] }
  0xa3   : > { %1332 = vmatprep.subr.bf16.mxu0 %v1331_v3  ;;  %v1339_v10 = vpack.c.bf16 %v628_v8, %v627_v6  ;;  %v1343_v14 = vpack.c.bf16 %v630_v12, %v629_v11  ;;  %v631_v16 = vld [vmem:[%s2131_s4 + $0x30] sm:$0xff]  ;;  %v632_v17 = vld [vmem:[%s2131_s4 + $0x38] sm:$0xff]  ;;  %v633_v19 = vld [vmem:[%s2131_s4 + $0x40] sm:$0xff] }
  0xa4   : > { %s2152_s13 = smov (!%p484_p5, %s1124_s13), 7  ;;  %1334 = vmatpush3.bf16.msra.mxu0 %v1331_v3  ;;  %1336 = vmatprep.subr.bf16.mxu1 %v1335_v7  ;;  %v1347_v18 = vpack.c.bf16 %v632_v17, %v631_v16  ;;  %v634_v20 = vld [vmem:[%s2131_s4 + $0x48] sm:$0xff]  ;;  %v635_v22 = vld [vmem:[%s2131_s4 + $0x50] sm:$0xff]  ;;  %v636_v23 = vld [vmem:[%s2131_s4 + $0x58] sm:$0xff] }
  0xa5   : > { %s1125_s22 = sshll.u32 %s2152_s13, 3  ;;  %1338 = vmatpush3.bf16.msra.mxu1 %v1335_v7  ;;  %v1351_v21 = vpack.c.bf16 %v634_v20, %v633_v19  ;;  %v1355_v24 = vpack.c.bf16 %v636_v23, %v635_v22  ;;  %v637_v25 = vld [vmem:[%s2131_s4 + $0x60] sm:$0xff]  ;;  %v638_v26 = vld [vmem:[%s2131_s4 + $0x68] sm:$0xff]  ;;  %v639_v28 = vld [vmem:[%s2131_s4 + $0x70] sm:$0xff] }
  0xa6   : > { %s487_s14 = scalar_lea.vmem %s2127_s0, %s1125_s22  ;;  %1340 = vmatprep.subr.bf16.mxu1 %v1339_v10  ;;  %v1359_v27 = vpack.c.bf16 %v638_v26, %v637_v25  ;;  %v640_v29 = vld [vmem:[%s2131_s4 + $0x78] sm:$0xff]  ;;  %v752_v31 = vld [vmem:[%s2134_s7] sm:$0xff]  ;;  %v753_v32 = vld [vmem:[%s2134_s7 + $0x8] sm:$0xff]  ;;  %s493_s29 = scalar_lea.vmem %s2139_s12, %s1125_s22 }
  0xa7   : > { %v495_v2 = vld [vmem:[%s487_s14] sm:$0xff]  ;;  %v496_v9 = vld [vmem:[%s487_s14 + $0x8] sm:$0xff]  ;;  %v497_v13 = vld [vmem:[%s487_s14 + $0x10] sm:$0xff]  ;;  %v1363_v30 = vpack.c.bf16 %v640_v29, %v639_v28  ;;  %v1367_v34 = vpack.c.bf16 %v753_v32, %v752_v31 }
  0xa8   : > { %1211 = vmatprep.mubr.msk.f32.mxu0 %vm501_vm0, %v495_v2  ;;  %v498_v15 = vld [vmem:[%s487_s14 + $0x18] sm:$0xff]  ;;  %v754_v33 = vld [vmem:[%s2134_s7 + $0x10] sm:$0xff]  ;;  %v756_v37 = vld [vmem:[%s2134_s7 + $0x20] sm:$0xff] }
  0xa9   : > { %1212 = vmatmul.mubr.msk.f32.vlgmr.msra.gmra.mrb[0].mxu0 %vm501_vm0, %v496_v9  ;;  %1342 = vmatpush3.bf16.msra.mxu1 %v1339_v10  ;;  %v755_v35 = vld [vmem:[%s2134_s7 + $0x18] sm:$0xff]  ;;  %v757_v38 = vld [vmem:[%s2134_s7 + $0x28] sm:$0xff]  ;;  %v758_v40 = vld [vmem:[%s2134_s7 + $0x30] sm:$0xff] }
  0xaa   : > { %1214 = vmatprep.mubr.msk.f32.mxu0 %vm501_vm0, %v497_v13  ;;  %1344 = vmatprep.subr.bf16.mxu1 %v1343_v14  ;;  %v1371_v36 = vpack.c.bf16 %v755_v35, %v754_v33  ;;  %v1375_v39 = vpack.c.bf16 %v757_v38, %v756_v37  ;;  %v759_v41 = vld [vmem:[%s2134_s7 + $0x38] sm:$0xff]  ;;  %v760_v43 = vld [vmem:[%s2134_s7 + $0x40] sm:$0xff]  ;;  %v761_v44 = vld [vmem:[%s2134_s7 + $0x48] sm:$0xff] }
  0xab   : > { %1368 = vmatprep.subr.bf16.mxu0 %v1367_v34  ;;  %v1379_v42 = vpack.c.bf16 %v759_v41, %v758_v40  ;;  %v1383_v45 = vpack.c.bf16 %v761_v44, %v760_v43  ;;  %v762_v46 = vld [vmem:[%s2134_s7 + $0x50] sm:$0xff]  ;;  %v763_v47 = vld [vmem:[%s2134_s7 + $0x58] sm:$0xff]  ;;  %v1132_v49 = vld [vmem:[%s2129_s2] ss:$0 sm:$0xff] }
  0xac   : > { %1370 = vmatpush3.bf16.msra.mxu0 %v1367_v34  ;;  %v1387_v48 = vpack.c.bf16 %v763_v47, %v762_v46  ;;  %v1133_v51 = vld [vmem:[%s2130_s3] ss:$0 sm:$0xff]  ;;  %v765_v4 = vld [vmem:[%s2134_s7 + $0x68] sm:$0xff]  ;;  %v766_v6 = vld [vmem:[%s2134_s7 + $0x70] sm:$0xff] }
  0xad   : > { %1215 = vmatmul.mubr.msk.f32.gmra.mrb[2].mxu0 %vm501_vm0, %v498_v15  ;;  %1346 = vmatpush3.bf16.msra.mxu1 %v1343_v14  ;;  %v764_v3 = vld [vmem:[%s2134_s7 + $0x60] sm:$0xff]  ;;  %v767_v7 = vld [vmem:[%s2134_s7 + $0x78] sm:$0xff]  ;;  %v880_v10 = vld [vmem:[%s2137_s10 + $0x8] sm:$0xff] }
  0xae   : > { %1348 = vmatprep.subr.bf16.mxu1 %v1347_v18  ;;  %1372 = vmatprep.subr.bf16.mxu0 %v1371_v36  ;;  %v1391_v5 = vpack.c.bf16 %v765_v4, %v764_v3  ;;  %v1395_v8 = vpack.c.bf16 %v767_v7, %v766_v6  ;;  %v879_v9 = vld [vmem:[%s2137_s10] sm:$0xff]  ;;  %v881_v11 = vld [vmem:[%s2137_s10 + $0x10] sm:$0xff]  ;;  %v882_v13 = vld [vmem:[%s2137_s10 + $0x18] sm:$0xff] }
  0xaf   : > { %v1399_v12 = vpack.c.bf16 %v880_v10, %v879_v9  ;;  %v1403_v14 = vpack.c.bf16 %v882_v13, %v881_v11  ;;  %v883_v15 = vld [vmem:[%s2137_s10 + $0x20] sm:$0xff]  ;;  %v884_v16 = vld [vmem:[%s2137_s10 + $0x28] sm:$0xff]  ;;  %v886_v19 = vld [vmem:[%s2137_s10 + $0x38] sm:$0xff] }
  0xb0   : > { %1374 = vmatpush3.bf16.msra.mxu0 %v1371_v36  ;;  %v1407_v17 = vpack.c.bf16 %v884_v16, %v883_v15  ;;  %v888_v22 = vld [vmem:[%s2137_s10 + $0x48] sm:$0xff]  ;;  %v890_v25 = vld [vmem:[%s2137_s10 + $0x58] sm:$0xff]  ;;  %v1135_v29 = vld [vmem:[#allocation6] ss:$0 sm:$0xff] }
  0xb1   : > { %1350 = vmatpush3.bf16.msra.mxu1 %v1347_v18  ;;  %1376 = vmatprep.subr.bf16.mxu0 %v1375_v39  ;;  %v885_v18 = vld [vmem:[%s2137_s10 + $0x30] sm:$0xff]  ;;  %v892_v46 = vld [vmem:[%s2137_s10 + $0x68] sm:$0xff] }
  0xb2   : > { %1352 = vmatprep.subr.bf16.mxu1 %v1351_v21  ;;  %v1411_v20 = vpack.c.bf16 %v886_v19, %v885_v18 }
  0xb4   : > { %1378 = vmatpush3.bf16.msra.mxu0 %v1375_v39 }
  0xb5   : > { %1354 = vmatpush3.bf16.msra.mxu1 %v1351_v21  ;;  %1380 = vmatprep.subr.bf16.mxu0 %v1379_v42  ;;  %v887_v21 = vld [vmem:[%s2137_s10 + $0x40] sm:$0xff] }
  0xb6   : > { %1356 = vmatprep.subr.bf16.mxu1 %v1355_v24  ;;  %v1415_v23 = vpack.c.bf16 %v888_v22, %v887_v21 }
  0xb8   : > { %1382 = vmatpush3.bf16.msra.mxu0 %v1379_v42 }
  0xb9   : > { %1358 = vmatpush3.bf16.msra.mxu1 %v1355_v24  ;;  %1384 = vmatprep.subr.bf16.mxu0 %v1383_v45  ;;  %v889_v24 = vld [vmem:[%s2137_s10 + $0x50] sm:$0xff] }
  0xba   : > { %1360 = vmatprep.subr.bf16.mxu1 %v1359_v27  ;;  %v1419_v26 = vpack.c.bf16 %v890_v25, %v889_v24 }
  0xbc   : > { %1386 = vmatpush3.bf16.msra.mxu0 %v1383_v45  ;;  %v891_v45 = vld [vmem:[%s2137_s10 + $0x60] sm:$0xff] }
  0xbd   : > { %1362 = vmatpush3.bf16.msra.mxu1 %v1359_v27  ;;  %1388 = vmatprep.subr.bf16.mxu0 %v1387_v48  ;;  %v1134_v27 = vld [vmem:[#allocation4] ss:$0 sm:$0xff]  ;;  %v1423_v47 = vpack.c.bf16 %v892_v46, %v891_v45 }
  0xbe   : > { %1364 = vmatprep.subr.bf16.mxu1 %v1363_v30 }
  0xc0   : > { %1390 = vmatpush3.bf16.msra.mxu0 %v1387_v48  ;;  %v893_v48 = vld [vmem:[%s2137_s10 + $0x70] sm:$0xff] }
  0xc1   : > { %1366 = vmatpush3.bf16.msra.mxu1 %v1363_v30  ;;  %1392 = vmatprep.subr.bf16.mxu0 %v1391_v5 }
  0xc2   : > { %1400 = vmatprep.subr.bf16.mxu1 %v1399_v12 }
  0xc4   : > { %1394 = vmatpush3.bf16.msra.mxu0 %v1391_v5  ;;  %v1138_v5 = vld [vmem:[#allocation10] ss:$0 sm:$0xff] }
  0xc5   : > { %1396 = vmatprep.subr.bf16.mxu0 %v1395_v8 }
  0xc8   : > { %1398 = vmatpush3.bf16.msra.mxu0 %v1395_v8 }
 0x17c   : > { %v1213_v50 = vpop.f32.mrb[0].mxu0 }
 0x17d   : > { %v607_v52 = vmul.f32 %v1213_v50, %v1132_v49  ;;  %v580_v53 = vpop.f32.mrb[1].mxu0 }
 0x17e   : > { %v606_v54 = vmul.f32 %v1132_v49, %v580_v53  ;;  %v1137_v53 = vld [vmem:[#allocation9] ss:$0 sm:$0xff] }
 0x17f   : > { %v618_v55 = vadd.f32 %v1133_v51, %v607_v52 }
 0x180   : > { %v1216_v56 = vpop.f32.mrb[2].mxu0  ;;  %v617_v57 = vadd.f32 %v1133_v51, %v606_v54 }
 0x181   : > { %v609_v58 = vmul.f32 %v1216_v56, %v1132_v49  ;;  %v590_v59 = vpop.f32.mrb[3].mxu0  ;;  %v622_v62 = vmax.f32 %v618_v55, 0.0 }
 0x182   : > { %v608_v60 = vmul.f32 %v1132_v49, %v590_v59  ;;  %v621_v61 = vmax.f32 %v617_v57, 0.0  ;;  %v894_v49 = vld [vmem:[%s2137_s10 + $0x78] sm:$0xff] }
 0x183   : > { %v620_v63 = vadd.f32 %v1133_v51, %v609_v58  ;;  %v1427_v50 = vpack.c.bf16 %v894_v49, %v893_v48 }
 0x184   : > { %v619_v0 = vadd.f32 %v1133_v51, %v608_v60  ;;  %1249 = vmatprep.mubr.f32.mxu1 %v621_v61  ;;  %v1136_v51 = vld [vmem:[#allocation7] ss:$0 sm:$0xff] }
 0x185   : > { %1250 = vmatmul.mubr.f32.vlgmr.msra.gmra.mrb[0].mxu1 %v622_v62  ;;  %v624_v2 = vmax.f32 %v620_v63, 0.0 }
 0x186   : > { %v623_v1 = vmax.f32 %v619_v0, 0.0  ;;  %1402 = vmatpush3.bf16.msra.mxu1 %v1399_v12 }
 0x187   : > { %1404 = vmatprep.subr.bf16.mxu1 %v1403_v14 }
 0x188   : > { %1252 = vmatprep.mubr.f32.mxu1 %v623_v1 }
 0x189   : > { %1253 = vmatmul.mubr.f32.gmra.mrb[2].mxu1 %v624_v2 }
 0x18a   : > { %1406 = vmatpush3.bf16.msra.mxu1 %v1403_v14 }
 0x18b   : > { %1408 = vmatprep.subr.bf16.mxu1 %v1407_v17 }
 0x18e   : > { %1410 = vmatpush3.bf16.msra.mxu1 %v1407_v17 }
 0x18f   : > { %1412 = vmatprep.subr.bf16.mxu1 %v1411_v20 }
 0x192   : > { %1414 = vmatpush3.bf16.msra.mxu1 %v1411_v20 }
 0x193   : > { %1416 = vmatprep.subr.bf16.mxu1 %v1415_v23 }
 0x196   : > { %1418 = vmatpush3.bf16.msra.mxu1 %v1415_v23 }
 0x197   : > { %1420 = vmatprep.subr.bf16.mxu1 %v1419_v26 }
 0x19a   : > { %1422 = vmatpush3.bf16.msra.mxu1 %v1419_v26 }
 0x19b   : > { %1424 = vmatprep.subr.bf16.mxu1 %v1423_v47 }
 0x19e   : > { %1426 = vmatpush3.bf16.msra.mxu1 %v1423_v47 }
 0x19f   : > { %1428 = vmatprep.subr.bf16.mxu1 %v1427_v50 }
 0x1a2   : > { %1430 = vmatpush3.bf16.msra.mxu1 %v1427_v50 }
 0x258   : > { %v1251_v28 = vpop.f32.mrb[0].mxu1 }
 0x259   : > { %v734_v30 = vmul.f32 %v1251_v28, %v1134_v27  ;;  %v707_v31 = vpop.f32.mrb[1].mxu1 }
 0x25a   : > { %v733_v32 = vmul.f32 %v1134_v27, %v707_v31 }
 0x25b   : > { %v745_v33 = vadd.f32 %v1135_v29, %v734_v30 }
 0x25c   : > { %v744_v34 = vadd.f32 %v1135_v29, %v733_v32  ;;  %v1254_v35 = vpop.f32.mrb[2].mxu1 }
 0x25d   : > { %v736_v36 = vmul.f32 %v1254_v35, %v1134_v27  ;;  %v717_v37 = vpop.f32.mrb[3].mxu1  ;;  %v749_v40 = vmax.f32 %v745_v33, 0.0 }
 0x25e   : > { %v748_v38 = vmax.f32 %v744_v34, 0.0  ;;  %v735_v39 = vmul.f32 %v1134_v27, %v717_v37 }
 0x25f   : > { %v747_v41 = vadd.f32 %v1135_v29, %v736_v36 }
 0x260   : > { %v746_v42 = vadd.f32 %v1135_v29, %v735_v39  ;;  %1287 = vmatprep.mubr.f32.mxu0 %v748_v38 }
 0x261   : > { %1288 = vmatmul.mubr.f32.vlgmr.msra.gmra.mrb[4].mxu0 %v749_v40  ;;  %v751_v44 = vmax.f32 %v747_v41, 0.0 }
 0x262   : > { %v750_v43 = vmax.f32 %v746_v42, 0.0 }
 0x264   : > { %1290 = vmatprep.mubr.f32.mxu0 %v750_v43 }
 0x265   : > { %1291 = vmatmul.mubr.f32.gmra.mrb[6].mxu0 %v751_v44 }
 0x334   : > { %v1289_v52 = vpop.f32.mrb[4].mxu0 }
 0x335   : > { %v861_v54 = vmul.f32 %v1289_v52, %v1136_v51  ;;  %v834_v55 = vpop.f32.mrb[5].mxu0 }
 0x336   : > { %v860_v56 = vmul.f32 %v1136_v51, %v834_v55 }
 0x337   : > { %v872_v57 = vadd.f32 %v1137_v53, %v861_v54 }
 0x338   : > { %v871_v58 = vadd.f32 %v1137_v53, %v860_v56  ;;  %v1292_v59 = vpop.f32.mrb[6].mxu0 }
 0x339   : > { %v863_v60 = vmul.f32 %v1292_v59, %v1136_v51  ;;  %v844_v61 = vpop.f32.mrb[7].mxu0  ;;  %v876_v0 = vmax.f32 %v872_v57, 0.0 }
 0x33a   : > { %v875_v62 = vmax.f32 %v871_v58, 0.0  ;;  %v862_v63 = vmul.f32 %v1136_v51, %v844_v61 }
 0x33b   : > { %v874_v1 = vadd.f32 %v1137_v53, %v863_v60 }
 0x33c   : > { %v873_v2 = vadd.f32 %v1137_v53, %v862_v63  ;;  %1325 = vmatprep.mubr.f32.mxu1 %v875_v62 }
 0x33d   : > { %1326 = vmatmul.mubr.f32.vlgmr.msra.gmra.mrb[4].mxu1 %v876_v0  ;;  %v878_v4 = vmax.f32 %v874_v1, 0.0 }
 0x33e   : > { %v877_v3 = vmax.f32 %v873_v2, 0.0 }
 0x340   : > { %1328 = vmatprep.mubr.f32.mxu1 %v877_v3 }
 0x341   : > { %1329 = vmatmul.mubr.f32.gmra.mrb[6].mxu1 %v878_v4 }
 0x410   : > { %v1327_v6 = vpop.f32.mrb[4].mxu1 }
 0x411   : > { %v968_v7 = vpop.f32.mrb[5].mxu1  ;;  %v974_v9 = vadd.f32 %v1327_v6, %v1138_v5 }
 0x412   : > { %v969_v8 = vadd.f32 %v1138_v5, %v968_v7 }
 0x413   : > { %988 = vst.msk [vmem:[%s493_s29 + $0x8] sm:$0xff] %vm501_vm0, %v974_v9 }
 0x414   : > { %987 = vst.msk [vmem:[%s493_s29] sm:$0xff] %vm501_vm0, %v969_v8  ;;  %v1330_v10 = vpop.f32.mrb[6].mxu1 }
 0x415   : > { %v978_v11 = vpop.f32.mrb[7].mxu1  ;;  %v984_v13 = vadd.f32 %v1330_v10, %v1138_v5 }
 0x416   : > { %v979_v12 = vadd.f32 %v1138_v5, %v978_v11 }
 0x417   : > { %990 = vst.msk [vmem:[%s493_s29 + $0x18] sm:$0xff] %vm501_vm0, %v984_v13 }
 0x418   : > { %989 = vst.msk [vmem:[%s493_s29 + $0x10] sm:$0xff] %vm501_vm0, %v979_v12 }
 0x419 PF: > { %s26_s21 = sadd.s32 1, %s1692_s21  }
 0x41a   : > { %p23_p7 = scmp.ge.s32.totalorder %s26_s21, 4  }
 0x41c   :  { %25 = sbr.rel (!%p23_p7) target bundleno = 4 (0x4), region = 123 }
 0x423   :  { %1013 = vsyncpa [#allocation3], 1 }
 0x424   :  { %1015 = vsyncpa [#allocation3 + $0x1], 1 }
 0x425   :  { %1016 = vsyncpa [#allocation5], 1 }
 0x426   :  { %1017 = vsyncpa [#allocation8], 1 }
 0x427   :  { %1018 = vsyncpa [#allocation11], 1 }

</bundles_post_ra>
